<compile_context>
chip_gen: v5e
topology: v5e:2x2
jax: 0.10.0
libtpu: 0.0.40
codegen_flags: <defaults>
</compile_context>

<pallas_src>
import functools

import jax
import jax.numpy as jnp
from jax import lax
from jax.experimental import pallas as pl
from jax.experimental.pallas import tpu as pltpu


def _round_up(x, m):
    return (x + m - 1) // m * m


def _cdiv(a, b):
    return (a + b - 1) // b


def _sublane_multiple(dtype):
    # 8 rows/vreg for 4-byte dtypes, 16 for bf16, 32 for int8/fp8.
    return max(8, 32 // jnp.dtype(dtype).itemsize)


def _hw_targets():
    """Generation-aware (tm, tn, tk) targets and scoped-VMEM cap."""
    phys = 64 * 2**20
    try:
        phys = int(getattr(pltpu.get_tpu_info(), "vmem_capacity_bytes", phys))
    except Exception:
        pass
    if phys >= 96 * 2**20:
        # 128-MiB-class VMEM (v5e / v6e): big tiles, raise the scoped-VMEM ceiling.
        return 1024, 1024, 512, min(phys * 3 // 4, 100 * 2**20)
    # 64-MiB-class VMEM (v7x): slightly smaller tiles, keep double-buffering headroom.
    return 768, 768, 512, min(phys * 3 // 4, 46 * 2**20)


def _pick_tile(dim, target, granule):
    """Largest tile <= target that is a multiple of `granule`; prefer one that divides
    `dim` exactly (down to target/2) so the wrapper doesn't have to jnp.pad the operand."""
    dim_r = _round_up(dim, granule)
    t = _round_up(min(target, dim_r), granule)
    if dim_r == dim:
        cand = t
        floor = max(granule, t // 2)
        while cand >= floor:
            if dim % cand == 0:
                return cand
            cand -= granule
    return t


def _linear_kernel(x_ref, w_ref, *rest, has_bias=True, mxu_dtype=None):
    # x_ref:  (tm, tk)  activation tile
    # w_ref:  (tn, tk)  weight tile, PyTorch layout (out_features, in_features)
    # b_ref:  (1,  tn)  bias row tile (only when has_bias)
    # o_ref:  (tm, tn)  output tile
    # acc_ref:(tm, tn)  f32 accumulator (persists across the K axis)
    if has_bias:
        b_ref, o_ref, acc_ref = rest
    else:
        b_ref = None
        o_ref, acc_ref = rest

    k = pl.program_id(2)

    @pl.when(k == 0)
    def _():
        acc_ref[...] = jnp.zeros_like(acc_ref)

    x = x_ref[...]
    w = w_ref[...]
    if mxu_dtype is not None:
        x = x.astype(mxu_dtype)
        w = w.astype(mxu_dtype)

    # Contract x's dim 1 with w's dim 1 (the K axis) -> (tm, tn); the implied W^T is
    # absorbed into the MXU feed, no materialized transpose.
    acc_ref[...] += lax.dot_general(
        x, w,
        dimension_numbers=(((1,), (1,)), ((), ())),
        preferred_element_type=jnp.float32,
    )

    @pl.when(k == pl.num_programs(2) - 1)
    def _():
        out = acc_ref[...]
        if b_ref is not None:
            out = out + b_ref[...].astype(jnp.float32)
        o_ref[...] = out.astype(o_ref.dtype)


def linear_normal_forward(x, weight, bias=None, *, tm=None, tn=None, tk=None,
                          mxu_dtype=None):
    """F.linear(x, weight, bias) with weight of shape (out_features, in_features)."""
    orig_shape = x.shape
    out_features, in_features = weight.shape
    assert orig_shape[-1] == in_features
    assert x.dtype == weight.dtype, "x and weight dtypes must match"
    if bias is not None:
        assert bias.shape == (out_features,)

    x2d = x.reshape(-1, in_features)
    M, K, N = x2d.shape[0], in_features, out_features

    tm_t, tn_t, tk_t, vmem_cap = _hw_targets()
    tm = tm_t if tm is None else tm
    tn = tn_t if tn is None else tn
    tk = tk_t if tk is None else tk

    sub = _sublane_multiple(x.dtype)
    tm_eff = _pick_tile(M, tm, sub)
    tn_eff = _pick_tile(N, tn, 128)
    tk_eff = _pick_tile(K, tk, 128)

    M_pad = _round_up(M, tm_eff)
    N_pad = _round_up(N, tn_eff)
    K_pad = _round_up(K, tk_eff)

    # Guarantee >= 2 blocks on the "parallel" axes when the problem allows it, so both
    # v7x TensorCores get work (negligible extra cost on single-TC v5e/v6e).
    if (M_pad // tm_eff) * (N_pad // tn_eff) < 2:
        if N > 128 and tn_eff > 128:
            tn_eff = _round_up(_cdiv(N, 2), 128)
            N_pad = _round_up(N, tn_eff)
        elif M > sub and tm_eff > sub:
            tm_eff = _round_up(_cdiv(M, 2), sub)
            M_pad = _round_up(M, tm_eff)

    # Zero-pad only when the tile picker couldn't find an exact divisor (zeros along K
    # contribute nothing; padded M rows / N cols are sliced away afterwards).
    if (M_pad, K_pad) != (M, K):
        x2d = jnp.pad(x2d, ((0, M_pad - M), (0, K_pad - K)))
    w = weight
    if (N_pad, K_pad) != (N, K):
        w = jnp.pad(w, ((0, N_pad - N), (0, K_pad - K)))

    has_bias = bias is not None
    inputs = [x2d, w]
    in_specs = [
        pl.BlockSpec((tm_eff, tk_eff), lambda i, j, k: (i, k)),
        pl.BlockSpec((tn_eff, tk_eff), lambda i, j, k: (j, k)),
    ]
    if has_bias:
        b_row = bias.reshape(1, N)
        if N_pad != N:
            b_row = jnp.pad(b_row, ((0, 0), (0, N_pad - N)))
        inputs.append(b_row)
        in_specs.append(pl.BlockSpec((1, tn_eff), lambda i, j, k: (0, j)))

    grid = (M_pad // tm_eff, N_pad // tn_eff, K_pad // tk_eff)
    grid_m, grid_n, _ = grid

    itemsize = jnp.dtype(x.dtype).itemsize
    buf_bytes = (2 * (tm_eff * tk_eff + tn_eff * tk_eff) * itemsize   # double-buffered inputs
                 + 2 * tm_eff * tn_eff * itemsize                     # double-buffered output
                 + (2 * tn_eff * itemsize if has_bias else 0)
                 + tm_eff * tn_eff * 4)                               # f32 accumulator
    vmem_limit = int(min(max(2 * buf_bytes, 32 * 2**20), vmem_cap))

    cost = pl.CostEstimate(
        flops=2 * M * K * N,
        transcendentals=0,
        # Re-streamed traffic, not single-pass footprint.
        bytes_accessed=(M * K * grid_n + N * K * grid_m + M * N
                        + (N if has_bias else 0)) * itemsize,
    )

    kernel = functools.partial(_linear_kernel, has_bias=has_bias, mxu_dtype=mxu_dtype)

    out = pl.pallas_call(
        kernel,
        out_shape=jax.ShapeDtypeStruct((M_pad, N_pad), x.dtype),
        grid_spec=pltpu.PrefetchScalarGridSpec(
            num_scalar_prefetch=0,
            grid=grid,
            in_specs=in_specs,
            out_specs=pl.BlockSpec((tm_eff, tn_eff), lambda i, j, k: (i, j)),
            scratch_shapes=[pltpu.VMEM((tm_eff, tn_eff), jnp.float32)],
        ),
        compiler_params=pltpu.CompilerParams(
            dimension_semantics=("parallel", "parallel", "arbitrary"),
            vmem_limit_bytes=vmem_limit,
        ),
        cost_estimate=cost,
    )(*inputs)

    out = out[:M, :N]
    return out.reshape(*orig_shape[:-1], N)


def init_linear_normal_params(key, in_features, out_features, dtype=jnp.float32):
    """Params matching the PyTorch module:
    weight ~ xavier_normal_ (std = sqrt(2/(fan_in+fan_out))), bias = zeros."""
    std = (2.0 / (in_features + out_features)) ** 0.5
    weight = std * jax.random.normal(key, (out_features, in_features), dtype=dtype)
    bias = jnp.zeros((out_features,), dtype=dtype)
    return weight, bias


if __name__ == "__main__":
    key = jax.random.PRNGKey(0)
    k_w, k_x, k_w2, k_x2, k_w3, k_x3 = jax.random.split(key, 6)

    # 1) Small shapes consistent with the module's forward (batch, seq, in_features).
    batch, seq, in_features, out_features = 2, 8, 32, 64
    weight, bias = init_linear_normal_params(k_w, in_features, out_features)
    x = jax.random.normal(k_x, (batch, seq, in_features), dtype=jnp.float32)

    y = jax.block_until_ready(linear_normal_forward(x, weight, bias))
    y_ref = x @ weight.T + bias
    assert y.shape == (batch, seq, out_features)
    assert jnp.allclose(y, y_ref, atol=1e-5, rtol=1e-5)

    # 2) Multi-tile M/N and the K accumulation loop.
    M2, K2, N2 = 256, 256, 256
    w2, b2 = init_linear_normal_params(k_w2, K2, N2)
    x2 = jax.random.normal(k_x2, (M2, K2), dtype=jnp.float32)
    y2 = jax.block_until_ready(linear_normal_forward(x2, w2, b2, tk=128))
    y2_ref = x2 @ w2.T + b2
    assert jnp.allclose(y2, y2_ref, atol=1e-4, rtol=1e-4)

    # 3) bias=None path (no bias input / DMA at all), plus the opt-in bf16 MXU feed.
    M3, K3, N3 = 64, 128, 128
    w3, _ = init_linear_normal_params(k_w3, K3, N3)
    x3 = jax.random.normal(k_x3, (M3, K3), dtype=jnp.float32)
    y3 = jax.block_until_ready(linear_normal_forward(x3, w3, None))
    y3_ref = x3 @ w3.T
    assert jnp.allclose(y3, y3_ref, atol=1e-4, rtol=1e-4)

    y3b = jax.block_until_ready(
        linear_normal_forward(x3, w3, None, mxu_dtype=jnp.bfloat16))
    assert jnp.allclose(y3b, y3_ref, atol=5e-2, rtol=5e-2)

    print("KERNEL_OK")
</pallas_src>

<mosaic_0001>
module attributes {stable_mosaic.version = 11 : i64} {
  func.func @_linear_kernel(%arg0: i32, %arg1: i32, %arg2: i32, %arg3: memref<8x128xf32, #tpu.memory_space<vmem>>, %arg4: memref<128x128xf32, #tpu.memory_space<vmem>>, %arg5: memref<1x128xf32, #tpu.memory_space<vmem>>, %arg6: memref<8x128xf32, #tpu.memory_space<vmem>>, %arg7: memref<8x128xf32, #tpu.memory_space<vmem>>) attributes {dimension_semantics = [#tpu.dimension_semantics<parallel>, #tpu.dimension_semantics<parallel>, #tpu.dimension_semantics<arbitrary>], iteration_bounds = array<i64: 2, 1, 1>, scalar_prefetch = 0 : i64, scratch_operands = 1 : i64, tpu.core_type = #tpu.core_type<tc>, window_params = [{transform_indices = @transform_0, window_bounds = array<i64: 8, 128>}, {transform_indices = @transform_1, window_bounds = array<i64: 128, 128>}, {transform_indices = @transform_2, window_bounds = array<i64: 1, 128>}, {transform_indices = @transform_3, window_bounds = array<i64: 8, 128>}]} {
    %c0_i32 = arith.constant 0 : i32
    %0 = arith.cmpi eq, %arg2, %c0_i32 : i32
    %1 = arith.extui %0 : i1 to i32
    %c0_i32_0 = arith.constant 0 : i32
    %2 = arith.cmpi ne, %1, %c0_i32_0 : i32
    scf.if %2 {
      %cst_10 = arith.constant 0.000000e+00 : f32
      %12 = vector.broadcast %cst_10 : f32 to vector<8x128xf32>
      %c0_11 = arith.constant 0 : index
      %c0_12 = arith.constant 0 : index
      %13 = vector.load %arg7[%c0_11, %c0_12] : memref<8x128xf32, #tpu.memory_space<vmem>>, vector<8x128xf32>
      tpu.vector_store %arg7[%c0_11, %c0_12], %12 {strides = array<i32>} : memref<8x128xf32, #tpu.memory_space<vmem>>, vector<8x128xf32>,
    } else {
    }
    %c0 = arith.constant 0 : index
    %c0_1 = arith.constant 0 : index
    %3 = vector.load %arg3[%c0, %c0_1] : memref<8x128xf32, #tpu.memory_space<vmem>>, vector<8x128xf32>
    %c0_2 = arith.constant 0 : index
    %c0_3 = arith.constant 0 : index
    %4 = vector.load %arg4[%c0_2, %c0_3] : memref<128x128xf32, #tpu.memory_space<vmem>>, vector<128x128xf32>
    %c0_4 = arith.constant 0 : index
    %c0_5 = arith.constant 0 : index
    %5 = vector.load %arg7[%c0_4, %c0_5] : memref<8x128xf32, #tpu.memory_space<vmem>>, vector<8x128xf32>
    %cst = arith.constant dense<0.000000e+00> : vector<8x128xf32>
    %6 = tpu.matmul %3, %4, %cst {dimension_numbers = #tpu.dot_dimension_numbers<[1], [1], [0], [0], [0, 0, 1, 0], [], []>} : vector<8x128xf32>, vector<128x128xf32>, vector<8x128xf32> -> vector<8x128xf32>
    %7 = arith.addf %5, %6 : vector<8x128xf32>
    %c0_6 = arith.constant 0 : index
    %c0_7 = arith.constant 0 : index
    %8 = vector.load %arg7[%c0_6, %c0_7] : memref<8x128xf32, #tpu.memory_space<vmem>>, vector<8x128xf32>
    tpu.vector_store %arg7[%c0_6, %c0_7], %7 {strides = array<i32>} : memref<8x128xf32, #tpu.memory_space<vmem>>, vector<8x128xf32>,
    %c0_i32_8 = arith.constant 0 : i32
    %9 = arith.cmpi eq, %arg2, %c0_i32_8 : i32
    %10 = arith.extui %9 : i1 to i32
    %c0_i32_9 = arith.constant 0 : i32
    %11 = arith.cmpi ne, %10, %c0_i32_9 : i32
    scf.if %11 {
      %c0_10 = arith.constant 0 : index
      %c0_11 = arith.constant 0 : index
      %12 = vector.load %arg7[%c0_10, %c0_11] : memref<8x128xf32, #tpu.memory_space<vmem>>, vector<8x128xf32>
      %c0_12 = arith.constant 0 : index
      %c0_13 = arith.constant 0 : index
      %13 = vector.load %arg5[%c0_12, %c0_13] : memref<1x128xf32, #tpu.memory_space<vmem>>, vector<1x128xf32>
      %14 = vector.broadcast %13 : vector<1x128xf32> to vector<8x128xf32>
      %15 = arith.addf %12, %14 : vector<8x128xf32>
      %c0_14 = arith.constant 0 : index
      %c0_15 = arith.constant 0 : index
      %16 = vector.load %arg6[%c0_14, %c0_15] : memref<8x128xf32, #tpu.memory_space<vmem>>, vector<8x128xf32>
      tpu.vector_store %arg6[%c0_14, %c0_15], %15 {strides = array<i32>} : memref<8x128xf32, #tpu.memory_space<vmem>>, vector<8x128xf32>,
    } else {
    }
    return
  }
  func.func @transform_0(%arg0: i32, %arg1: i32, %arg2: i32) -> (i32, i32) {
    %c0_i32 = arith.constant 0 : i32
    return %arg0, %arg2 : i32, i32
  }
  func.func @transform_1(%arg0: i32, %arg1: i32, %arg2: i32) -> (i32, i32) {
    %c0_i32 = arith.constant 0 : i32
    return %arg1, %arg2 : i32, i32
  }
  func.func @transform_2(%arg0: i32, %arg1: i32, %arg2: i32) -> (i32, i32) {
    %c0_i32 = arith.constant 0 : i32
    %c0_i32_0 = arith.constant 0 : i32
    return %c0_i32, %arg1 : i32, i32
  }
  func.func @transform_3(%arg0: i32, %arg1: i32, %arg2: i32) -> (i32, i32) {
    %c0_i32 = arith.constant 0 : i32
    return %arg0, %arg1 : i32, i32
  }
}

</mosaic_0001>

<bundles_post_ra>
// kernel: tpu_custom_call.1
= control target key start
LH: loop header
LB: loop body
LE: loop exit
PB: predicated region body
PF: predicated region fallthrough
CT: control target
= control target key end

     0   :  { %8 = vsyncpa [#allocation4], 0  ;;  %s852_s0 = inlined_call_operand.hbm [shape: f32[16,128], index: 0, kind: input, shape index: {}]   ;;  %s853_s1 = inlined_call_operand.hbm [shape: f32[128,128], index: 1, kind: input, shape index: {}]   ;;  %s854_s2 = inlined_call_operand.vmem [shape: f32[1,128], index: 2, kind: input, shape index: {}]   ;;  %s855_s3 = inlined_call_operand.hbm [shape: f32[16,128], index: 3, kind: output, shape index: {}]  }
   0x1   :  { %10 = vsyncpa [#allocation4 + $0x1], 0 }
   0x2   :  { %11 = vsyncpa [#allocation7], 0 }
   0x3   :  { %12 = vsyncpa [#allocation5], 0 }
   0x4   :  { %14 = vsyncpa [#allocation5 + $0x1], 0  ;;  %s699_s12 = smov 0   ;;  %s701_s13 = smov 0  }
   0x5   :  { %s703_s14 = smov 0   ;;  %s705_s15 = smov 0  }
   0x6   :  { %s707_s16 = smov 0   ;;  %s709_s17 = smov 0  }
   0x7 LB: > { %s436_s18 = sadd.s32 4294967295, %s674_s17   ;;  %p438_p0 = scmp.ge.s32.totalorder %s674_s17, 1  ;;  %s674_s17 = sphi %s709_s17, %s20_s17   ;;  %s670_s16 = sphi %s707_s16, %s866_s16   ;;  %s666_s15 = sphi %s705_s15, %s865_s15   ;;  %s662_s14 = sphi %s703_s14, %s864_s14   ;;  %s658_s13 = sphi %s701_s13, %s863_s13   ;;  %s654_s12 = sphi %s699_s12, %s862_s12  }
   0x8   : > { %p731_p1 = scmp.eq.s32.totalorder %s436_s18, 0  ;;  %p154_p2 = scmp.lt.s32.totalorder %s674_s17, 3 }
   0x9   : > { %s169_s22 = sshll.u32 %s853_s1, 4  ;;  %s676_s24 = smov [#allocation6]   ;;  %s170_s22 = int_to_ptr.hbm [resolvable:$true] %s169_s22 }
   0xa   : > { %p739_p3 = pnand %p438_p0, %p154_p2  ;;  %s171_s25 = sshll.u32 %s676_s24, 4  ;;  %s172_s25 = int_to_ptr.vmem [resolvable:$true] %s171_s25 }
   0xb   : > { %p441_p6 = scmp.ge.s32.totalorder %s674_s17, 2  ;;  %s677_s26 = smov 128  }
   0xc   : > { %p460_p4 = pneg %p739_p3  ;;  %s678_s27 = smov 8  }
   0xd   : > { %s437_s28 = sadd.s32 4294967294, %s674_s17   ;;  %s39_s29 = sadd.s32 1, %s670_s16 }
   0xe   : > { %p461_p5 = pnand %p460_p4, %p731_p1  ;;  %s48_s30 = sadd.s32 1, %s662_s14 }
   0xf   : > { %p41_p7 = scmp.ge.s32.totalorder %s39_s29, 2  ;;  %p55_p8 = scmp.ne.s32.totalorder %s662_s14, %s658_s13 }
  0x10   : > { %463 = dma.hbm_to_vmem [thread:$0]  (!%p461_p5), %s170_s22, 2048, %s172_s25, [#allocation7], %s677_s26, %s677_s26, %s678_s27  }
  0x11   : > { %p56_p9 = scmp.eq.s32.totalorder %s674_s17, 0  ;;  %p61_p10 = scmp.ne.s32.totalorder %s658_s13, %s654_s12 }
  0x12   : > { %s868_s29 = smov (%p41_p7, %s39_s29), 0  ;;  %p141_p13 = scmp.eq.s32.totalorder %s436_s18, 1 }
  0x13   : > { %p758_p11 = por %p56_p9, %p55_p8  ;;  %p764_p12 = por %p731_p1, %p61_p10 }
  0x14   : > { %s43_s6 = ssub.s32 %s670_s16, %s868_s29  ;;  %p147_p2 = scmp.eq.s32.totalorder %s437_s28, 1 }
  0x15   : > { %p46_p0 = scmp.eq.s32.totalorder %s43_s6, 0  ;;  %p770_p4 = por %p141_p13, %p55_p8 }
  0x16   : > { %p473_p5 = scmp.lt.s32.totalorder %s674_s17, 2  ;;  %p778_p7 = por %p147_p2, %p61_p10 }
  0x17   : > { %s776_s8 = scalar_select %p46_p0, %s662_s14, %s48_s30  }
  0x18   : > { %s191_s10 = sand.u32 1, %s662_s14   ;;  %s443_s20 = sshll.u32 %s670_s16, 3 }
  0x19   : > { %s442_s11 = sshll.u32 %s191_s10, 3  ;;  %s200_s18 = scalar_lea.hbm %s852_s0, %s443_s20 }
  0x1a   : > { %s195_s24 = scalar_lea.vmem [#allocation3], %s442_s11  ;;  %s202_s26 = sshll.u32 %s200_s18, 4  ;;  %s203_s26 = int_to_ptr.hbm [resolvable:$true] %s202_s26 }
  0x1b   : > { %s204_s25 = sshll.u32 %s195_s24, 4  ;;  %p465_p8 = pnand %p473_p5, %p758_p11  ;;  %s205_s25 = int_to_ptr.vmem [resolvable:$true] %s204_s25 }
  0x1c   : > { %s192_s27 = scalar_lea.sflag [#allocation4], %s191_s10  ;;  %213 = sbr.rel (%p739_p3) target bundleno = 231 (0xe7), region = 32 }
  0x1d   : > { %467 = dma.hbm_to_vmem [thread:$0]  (!%p465_p8), %s203_s26, 128, %s205_s25, %s192_s27  }
  0x1e   : > { %s792_s28 = sand.u32 (!%p739_p3), 1, %s658_s13  }
  0x1f   : > { %s445_s30 = sshll.u32 (!%p739_p3), %s792_s28, 3  ;;  %s216_s6 = scalar_lea.sflag (!%p739_p3), [#allocation4], %s792_s28 }
  0x20   : > { %s798_s11 = scalar_lea.vmem (!%p739_p3), [#allocation3], %s445_s30 }
  0x21   : > { %641 = dma.done.wait (%p764_p12), %s216_s6, 128  }
  0x22   : > { %643 = vsyncadd (%p764_p12), %s216_s6, 4294967168 }
  0x23   : > { %645 = dma.done.wait (%p731_p1), [#allocation7], 2048  }
  0x24   : > { %647 = vsyncadd (%p731_p1), [#allocation7], 4294965248  ;;  %v276_v0 = vld [vmem:[#allocation6 + $0x78] sm:$0xff]  ;;  %v275_v1 = vld [vmem:[#allocation6 + $0x70] sm:$0xff]  ;;  %s449_s19 = sshll.u32 %s666_s15, 3  ;;  %s250_s21 = scalar_lea.vmem [#allocation8], %s445_s30 }
  0x25   : > { %278 = vmatpush.xpose.msra.mxu0 %v276_v0  ;;  %v274_v2 = vld [vmem:[#allocation6 + $0x68] sm:$0xff]  ;;  %v273_v3 = vld [vmem:[#allocation6 + $0x60] sm:$0xff]  ;;  %v272_v4 = vld [vmem:[#allocation6 + $0x58] sm:$0xff]  ;;  %s322_s5 = scalar_lea.hbm %s855_s3, %s449_s19  ;;  %s324_s22 = sshll.u32 %s250_s21, 4  ;;  %s325_s22 = int_to_ptr.vmem [resolvable:$true] %s324_s22 }
  0x26   : > { %v271_v5 = vld [vmem:[#allocation6 + $0x50] sm:$0xff]  ;;  %v270_v6 = vld [vmem:[#allocation6 + $0x48] sm:$0xff]  ;;  %v269_v7 = vld [vmem:[#allocation6 + $0x40] sm:$0xff]  ;;  %s326_s18 = sshll.u32 %s322_s5, 4  ;;  %s311_s24 = scalar_lea.sflag [#allocation5], %s792_s28  ;;  %s327_s18 = int_to_ptr.hbm [resolvable:$true] %s326_s18 }
  0x27   : > { %v268_v8 = vld [vmem:[#allocation6 + $0x38] sm:$0xff]  ;;  %v267_v9 = vld [vmem:[#allocation6 + $0x30] sm:$0xff]  ;;  %v266_v10 = vld [vmem:[#allocation6 + $0x28] sm:$0xff]  ;;  %s602_s15 = sshra.s32 %s327_s18, 4  ;;  %s608_s6 = scalar_lea.hbm %s855_s3, 16  ;;  %s603_s15 = int_to_ptr.hbm [resolvable:$true] %s602_s15 }
  0x28   : > { %v265_v11 = vld [vmem:[#allocation6 + $0x20] sm:$0xff]  ;;  %v264_v12 = vld [vmem:[#allocation6 + $0x18] sm:$0xff]  ;;  %v263_v13 = vld [vmem:[#allocation6 + $0x10] sm:$0xff]  ;;  %s604_s25 = scalar_lea.hbm %s603_s15, 8  ;;  %p609_p10 = scmp.lt.s32.totalorder %s603_s15, %s855_s3 }
  0x29   : > { %279 = vmatpush.xpose.msra.mxu0 %v275_v1  ;;  %v262_v14 = vld [vmem:[#allocation6 + $0x8] sm:$0xff]  ;;  %v261_v15 = vld [vmem:[#allocation6] sm:$0xff]  ;;  %v260_v16 = vld [vmem:[%s798_s11] sm:$0xff]  ;;  %p605_p1 = scmp.ne.s32.totalorder %s603_s15, %s604_s25  ;;  %p610_p11 = scmp.lt.s32.totalorder %s608_s6, %s604_s25 }
  0x2a   : > { %v527_v17 = vld [vmem:[%s854_s2] ss:$0 sm:$0xff] }
  0x2b   : > { %p606_p3 = pnand %p605_p1, %p770_p4  ;;  %p611_p12 = por %p610_p11, %p609_p10 }
  0x2d   : > { %280 = vmatpush.xpose.msra.mxu0 %v274_v2  ;;  %p607_p9 = pneg %p606_p3 }
  0x2f   : > { %p612_p13 = pnand %p611_p12, %p607_p9 }
  0x31   : > { %281 = vmatpush.xpose.msra.mxu0 %v273_v3 }
  0x35   : > { %282 = vmatpush.xpose.msra.mxu0 %v272_v4 }
  0x39   : > { %283 = vmatpush.xpose.msra.mxu0 %v271_v5 }
  0x3d   : > { %284 = vmatpush.xpose.msra.mxu0 %v270_v6 }
  0x41   : > { %285 = vmatpush.xpose.msra.mxu0 %v269_v7 }
  0x45   : > { %286 = vmatpush.xpose.msra.mxu0 %v268_v8 }
  0x49   : > { %287 = vmatpush.xpose.msra.mxu0 %v267_v9 }
  0x4d   : > { %288 = vmatpush.xpose.msra.mxu0 %v266_v10 }
  0x51   : > { %289 = vmatpush.xpose.msra.mxu0 %v265_v11 }
  0x55   : > { %290 = vmatpush.xpose.msra.mxu0 %v264_v12 }
  0x59   : > { %291 = vmatpush.xpose.msra.mxu0 %v263_v13 }
  0x5d   : > { %292 = vmatpush.xpose.msra.mxu0 %v262_v14 }
  0x61   : > { %293 = vmatpush.xpose.msra.mxu0 %v261_v15 }
  0x64   : > { %294 = vmatmul.f32.vlgmr.msra.gmra.mxu0 %v260_v16 }
  0xe1   : > { %v295_v18 = vpop.f32.mrf.mxu0 }
  0xe2   : > { %v308_v19 = vadd.f32 %v527_v17, %v295_v18 }
  0xe4   : > { %309 = vst [vmem:[%s250_s21] sm:$0xff] %v308_v19 }
  0xe5   : > { %615 = shalt.err (!%p612_p13)
}
  0xe6   : > { %458 = dma.vmem_to_hbm [thread:$0]  (%p770_p4), %s325_s22, 128, %s327_s18, %s311_s24  }
  0xe7 PF: > { %s338_s28 = sand.u32 1, %s654_s12   ;;  %p469_p0 = pnand %p441_p6, %p778_p7 }
  0xe8   : > { %s339_s19 = scalar_lea.sflag [#allocation5], %s338_s28 }
  0xe9   : > { %p470_p2 = pneg %p469_p0 }
  0xeb   : > { %649 = dma.done.wait (%p470_p2), %s339_s19, 128  }
  0xec   : > { %651 = vsyncadd (%p470_p2), %s339_s19, 4294967168  ;;  %s20_s17 = sadd.s32 1, %s674_s17   ;;  %s862_s12 = smov %s658_s13 }
  0xed   : > { %p17_p5 = scmp.ge.s32.totalorder %s20_s17, 4   ;;  %s863_s13 = smov %s662_s14 }
  0xee   : > { %s864_s14 = smov %s776_s8  ;;  %s865_s15 = smov %s670_s16 }
  0xef   : > { %s866_s16 = smov %s868_s29  ;;  %19 = sbr.rel (!%p17_p5) target bundleno = 7 (0x7), region = 93 }
  0xf4   :  { %345 = vsyncpa [#allocation4], 1 }
  0xf5   :  { %347 = vsyncpa [#allocation4 + $0x1], 1 }
  0xf6   :  { %348 = vsyncpa [#allocation7], 1 }
  0xf7   :  { %349 = vsyncpa [#allocation5], 1 }
  0xf8   :  { %351 = vsyncpa [#allocation5 + $0x1], 1 }

</bundles_post_ra>
